<compile_context>
chip_gen: v5e
topology: v5e:2x2
jax: 0.10.0
libtpu: 0.0.40
codegen_flags: <defaults>
</compile_context>

<pallas_src>
import jax
import jax.numpy as jnp
from jax.experimental import pallas as pl
from jax.experimental.pallas import tpu as pltpu

GROUP = 8  # per batch-row output group: 4 rejections + 3 selectivities + 1 pad lane


def mlp_kernel(x_ref, w1_ref, wmid_ref, w4_ref, asel_ref, b123_ref, b4_ref, out_ref):
    def layer(h, w, b):
        y = jnp.dot(h.astype(w.dtype), w, preferred_element_type=jnp.float32) + b
        # sigmoid via tanh: a single EUP op + FMA instead of the logistic's VALU divide.
        return 0.5 * jnp.tanh(0.5 * y) + 0.5

    h = layer(x_ref[...], w1_ref[...], b123_ref[0])     # (TB, 32R)
    h = layer(h, wmid_ref[0], b123_ref[1])              # (TB, 32R)
    h = layer(h, wmid_ref[1], b123_ref[2])              # (TB, 32R)
    x0 = layer(h, w4_ref[...], b4_ref[...])             # (TB, 8R); lanes 4..7/group = 0.5 pad

    # Selectivities. Per 8-lane group g:
    #   lane 4 <- log(clip((1-x0[g,2]) / (1-x0[g,0]), 1e-4))
    #   lane 5 <- same with (1-x0[g,1]);  lane 6 <- same with (1-x0[g,3])
    # Lane routing / numerator broadcast via tiny constant selection matmuls (MXU slack);
    # unused lanes get num = den = 1 -> log(1) = 0.
    den = 1.0 - jnp.dot(x0, asel_ref[0], preferred_element_type=jnp.float32)
    num = 1.0 - jnp.dot(x0, asel_ref[1], preferred_element_type=jnp.float32)
    r = pl.reciprocal(den, approx=True)                 # EUP fast path
    r = r * (2.0 - den * r)                             # one Newton step -> ~f32 accuracy
    sel = jnp.log(jnp.maximum(num * r, 1e-4))

    lane = jax.lax.broadcasted_iota(jnp.int32, x0.shape, 1)
    # Single lane-dense store: lanes 0..3 of each group carry x0, lanes 4..6 the
    # selectivities, lane 7 is pad (= 0).
    out_ref[...] = jnp.where((lane & 7) < 4, x0, sel)


def init_mlp_params(key, input_dim, output_dim, neurons):
    """Deterministic init matching nn.Linear shapes: W (out, in), b (out,)."""
    dims = [(input_dim, neurons), (neurons, neurons), (neurons, neurons), (neurons, output_dim)]
    params = []
    for fan_in, fan_out in dims:
        key, kw, kb = jax.random.split(key, 3)
        bound = 1.0 / jnp.sqrt(fan_in)
        w = jax.random.uniform(kw, (fan_out, fan_in), jnp.float32, -bound, bound)
        b = jax.random.uniform(kb, (fan_out,), jnp.float32, -bound, bound)
        params.append((w, b))
    return params


def pack_params(params, lane_pack=8, io_dtype=jnp.float32):
    """Pack the 4 Linear layers into lane-packed, block-diagonal kernel buffers.

    Each weight (pre-transposed to (in, out)) is replicated `lane_pack` times along a
    block diagonal so `lane_pack` batch rows are processed side-by-side in the lane dim.
    """
    (w1, b1), (w2, b2), (w3, b3), (w4, b4) = params
    neurons = w1.shape[0]
    out_dim = w4.shape[0]
    assert out_dim == 4, "forward() hardcodes the 4 rejection columns"
    R = lane_pack
    eye = jnp.eye(R, dtype=jnp.float32)

    def bdiag(w_t):  # (in, out) -> (R*in, R*out) block diagonal, R copies
        return jnp.kron(eye, w_t.astype(jnp.float32)).astype(io_dtype)

    w1_bd = bdiag(w1.T)                                            # (16R, 32R)
    wmid = jnp.stack([bdiag(w2.T), bdiag(w3.T)], axis=0)           # (2, 32R, 32R)
    w4_pad = jnp.zeros((neurons, GROUP), jnp.float32).at[:, :out_dim].set(w4.T)
    w4_bd = bdiag(w4_pad)                                          # (32R, 8R); cols 4..7/group zero

    b123 = jnp.stack([jnp.tile(b1, R), jnp.tile(b2, R), jnp.tile(b3, R)],
                     axis=0).astype(jnp.float32)[:, None, :]       # (3, 1, 32R), f32 always
    b4_pad = jnp.zeros((GROUP,), jnp.float32).at[:out_dim].set(b4)
    b4_bd = jnp.tile(b4_pad, R)[None, :]                           # (1, 8R)

    # Constant per-group selection matrices for the selectivity post-processing:
    #   den: route x0 cols (0,1,3) into lanes (4,5,6); num: broadcast col 2 into lanes 4..6.
    a_den = jnp.zeros((GROUP, GROUP), jnp.float32)
    a_num = jnp.zeros((GROUP, GROUP), jnp.float32)
    for j, src in enumerate((0, 1, 3)):
        a_den = a_den.at[src, 4 + j].set(1.0)
        a_num = a_num.at[2, 4 + j].set(1.0)
    asel = jnp.stack([jnp.kron(eye, a_den), jnp.kron(eye, a_num)], axis=0)  # (2, 8R, 8R), f32

    return w1_bd, wmid, w4_bd, asel, b123, b4_bd


def mlp_forward(x, params, *, lane_pack=8, block_rows=1024, io_dtype=jnp.float32):
    # lane_pack=8 fills the 256-wide v6e/v7x MXU; use 4 on v5e.
    # block_rows = packed rows per grid step (1024 packed = 8192 batch rows at R=8);
    # VMEM use is ~6-7 MiB, well under scoped defaults on v5e/v6e/v7x.
    B, input_dim = x.shape
    R = lane_pack
    neurons = params[0][0].shape[0]
    w1_bd, wmid, w4_bd, asel, b123, b4_bd = pack_params(params, R, io_dtype)

    # Pad the batch to a multiple of R, then lane-pack R rows per packed row (free reshape).
    Bp = pl.cdiv(B, R) * R
    xp = x.astype(io_dtype)
    if Bp != B:
        xp = jnp.zeros((Bp, input_dim), io_dtype).at[:B].set(xp)
    xp = xp.reshape(Bp // R, input_dim * R)
    M = Bp // R
    in_w = input_dim * R
    out_w = GROUP * R

    # Tile the packed batch; keep >=4 grid steps when possible so v7x megacore can
    # shard the "parallel" axis over both TensorCores (no-op on v5e/v6e).
    if M <= 8:
        TB = M
    else:
        TB = max(8, (min(block_rows, pl.cdiv(M, 4)) // 8) * 8)
    grid = (pl.cdiv(M, TB),)

    flops = 2 * Bp * (input_dim * neurons + 2 * neurons * neurons
                      + neurons * GROUP + 2 * GROUP * GROUP)
    transcendentals = Bp * (3 * neurons + 3 * GROUP)
    bytes_accessed = int(xp.size * xp.dtype.itemsize + M * out_w * 4
                         + sum(a.size * a.dtype.itemsize
                               for a in (w1_bd, wmid, w4_bd, asel, b123, b4_bd)))

    out = pl.pallas_call(
        mlp_kernel,
        out_shape=jax.ShapeDtypeStruct((M, out_w), jnp.float32),
        grid=grid,
        in_specs=[
            pl.BlockSpec((TB, in_w), lambda i: (i, 0)),        # batch-tiled activations
            pl.BlockSpec(w1_bd.shape, lambda i: (0, 0)),       # weights: VMEM-resident
            pl.BlockSpec(wmid.shape, lambda i: (0, 0, 0)),
            pl.BlockSpec(w4_bd.shape, lambda i: (0, 0)),
            pl.BlockSpec(asel.shape, lambda i: (0, 0, 0)),
            pl.BlockSpec(b123.shape, lambda i: (0, 0, 0)),
            pl.BlockSpec(b4_bd.shape, lambda i: (0, 0)),
        ],
        out_specs=pl.BlockSpec((TB, out_w), lambda i: (i, 0)),
        compiler_params=pltpu.CompilerParams(
            dimension_semantics=("parallel",),                 # v7x: shard batch over 2 TCs
        ),
        cost_estimate=pl.CostEstimate(flops=flops, transcendentals=transcendentals,
                                      bytes_accessed=bytes_accessed),
    )(xp, w1_bd, wmid, w4_bd, asel, b123, b4_bd)

    # Unpack lanes back to rows: (M, 8R) -> (Bp, 8) -> (B, 7).
    return out.reshape(Bp, GROUP)[:B, : 4 + 3]


def mlp_reference(x, params):
    h = jnp.asarray(x, jnp.float32)
    for w, b in params:
        h = jax.nn.sigmoid(h @ w.T + b)
    x0 = h
    num = 1.0 - x0[:, 2:3]
    sel1 = jnp.log(jnp.maximum(num / (1.0 - x0[:, 0:1]), 1e-4))
    sel2 = jnp.log(jnp.maximum(num / (1.0 - x0[:, 1:2]), 1e-4))
    sel3 = jnp.log(jnp.maximum(num / (1.0 - x0[:, 3:4]), 1e-4))
    return jnp.concatenate([x0, sel1, sel2, sel3], axis=-1)


if __name__ == "__main__":
    key = jax.random.PRNGKey(0)
    batch, input_dim, output_dim, neurons = 64, 16, 4, 32

    kx, kp = jax.random.split(key)
    x = jax.random.normal(kx, (batch, input_dim), jnp.float32)
    params = init_mlp_params(kp, input_dim, output_dim, neurons)

    out = jax.block_until_ready(mlp_forward(x, params))
    ref = mlp_reference(x, params)
    assert out.shape == (batch, output_dim + 3)
    assert jnp.allclose(out[:, :4], ref[:, :4], atol=2e-4, rtol=2e-4)
    assert jnp.allclose(out[:, 4:], ref[:, 4:], atol=2e-3, rtol=2e-3)

    # Exercise: batch not a multiple of the lane pack, multi-step grid, partial last tile.
    x2 = jax.random.normal(jax.random.fold_in(kx, 1), (201, input_dim), jnp.float32)
    out2 = jax.block_until_ready(mlp_forward(x2, params))
    ref2 = mlp_reference(x2, params)
    assert out2.shape == (201, output_dim + 3)
    assert jnp.allclose(out2[:, :4], ref2[:, :4], atol=2e-4, rtol=2e-4)
    assert jnp.allclose(out2[:, 4:], ref2[:, 4:], atol=2e-3, rtol=2e-3)

    print("KERNEL_OK")
</pallas_src>

<mosaic_0001>
module attributes {stable_mosaic.version = 11 : i64} {
  func.func @mlp_kernel(%arg0: i32, %arg1: memref<8x128xf32, #tpu.memory_space<vmem>>, %arg2: memref<128x256xf32, #tpu.memory_space<vmem>>, %arg3: memref<2x256x256xf32, #tpu.memory_space<vmem>>, %arg4: memref<256x64xf32, #tpu.memory_space<vmem>>, %arg5: memref<2x64x64xf32, #tpu.memory_space<vmem>>, %arg6: memref<3x1x256xf32, #tpu.memory_space<vmem>>, %arg7: memref<1x64xf32, #tpu.memory_space<vmem>>, %arg8: memref<8x64xf32, #tpu.memory_space<vmem>>) attributes {dimension_semantics = [#tpu.dimension_semantics<parallel>], iteration_bounds = array<i64: 1>, scalar_prefetch = 0 : i64, scratch_operands = 0 : i64, tpu.core_type = #tpu.core_type<tc>, window_params = [{transform_indices = @transform_0, window_bounds = array<i64: 8, 128>}, {pipeline_mode = #tpu.pipeline_mode<synchronous>, transform_indices = @transform_1, window_bounds = array<i64: 128, 256>}, {pipeline_mode = #tpu.pipeline_mode<synchronous>, transform_indices = @transform_2, window_bounds = array<i64: 2, 256, 256>}, {pipeline_mode = #tpu.pipeline_mode<synchronous>, transform_indices = @transform_3, window_bounds = array<i64: 256, 64>}, {pipeline_mode = #tpu.pipeline_mode<synchronous>, transform_indices = @transform_4, window_bounds = array<i64: 2, 64, 64>}, {pipeline_mode = #tpu.pipeline_mode<synchronous>, transform_indices = @transform_5, window_bounds = array<i64: 3, 1, 256>}, {pipeline_mode = #tpu.pipeline_mode<synchronous>, transform_indices = @transform_6, window_bounds = array<i64: 1, 64>}, {transform_indices = @transform_7, window_bounds = array<i64: 8, 64>}]} {
    %c0 = arith.constant 0 : index
    %c0_0 = arith.constant 0 : index
    %0 = vector.load %arg1[%c0, %c0_0] : memref<8x128xf32, #tpu.memory_space<vmem>>, vector<8x128xf32>
    %c0_1 = arith.constant 0 : index
    %c0_2 = arith.constant 0 : index
    %1 = vector.load %arg2[%c0_1, %c0_2] : memref<128x256xf32, #tpu.memory_space<vmem>>, vector<128x256xf32>
    %c0_3 = arith.constant 0 : index
    %c0_4 = arith.constant 0 : index
    %c0_5 = arith.constant 0 : index
    %2 = vector.load %arg6[%c0_3, %c0_4, %c0_5] : memref<3x1x256xf32, #tpu.memory_space<vmem>>, vector<1x1x256xf32>
    %3 = vector.shape_cast %2 : vector<1x1x256xf32> to vector<1x256xf32>
    %cst = arith.constant dense<0.000000e+00> : vector<8x256xf32>
    %4 = tpu.matmul %0, %1, %cst {dimension_numbers = #tpu.dot_dimension_numbers<[1], [0], [0], [1], [0, 0, 1, 1], [], []>} : vector<8x128xf32>, vector<128x256xf32>, vector<8x256xf32> -> vector<8x256xf32>
    %5 = vector.broadcast %3 : vector<1x256xf32> to vector<8x256xf32>
    %6 = arith.addf %4, %5 : vector<8x256xf32>
    %cst_6 = arith.constant 5.000000e-01 : f32
    %7 = vector.broadcast %cst_6 : f32 to vector<8x256xf32>
    %8 = arith.mulf %7, %6 : vector<8x256xf32>
    %9 = math.tanh %8 : vector<8x256xf32>
    %cst_7 = arith.constant 5.000000e-01 : f32
    %10 = vector.broadcast %cst_7 : f32 to vector<8x256xf32>
    %11 = arith.mulf %10, %9 : vector<8x256xf32>
    %cst_8 = arith.constant 5.000000e-01 : f32
    %12 = vector.broadcast %cst_8 : f32 to vector<8x256xf32>
    %13 = arith.addf %11, %12 : vector<8x256xf32>
    %c0_9 = arith.constant 0 : index
    %c0_10 = arith.constant 0 : index
    %c0_11 = arith.constant 0 : index
    %14 = vector.load %arg3[%c0_9, %c0_10, %c0_11] : memref<2x256x256xf32, #tpu.memory_space<vmem>>, vector<1x256x256xf32>
    %15 = vector.shape_cast %14 : vector<1x256x256xf32> to vector<256x256xf32>
    %c1 = arith.constant 1 : index
    %c0_12 = arith.constant 0 : index
    %c0_13 = arith.constant 0 : index
    %16 = vector.load %arg6[%c1, %c0_12, %c0_13] : memref<3x1x256xf32, #tpu.memory_space<vmem>>, vector<1x1x256xf32>
    %17 = vector.shape_cast %16 : vector<1x1x256xf32> to vector<1x256xf32>
    %cst_14 = arith.constant dense<0.000000e+00> : vector<8x256xf32>
    %18 = tpu.matmul %13, %15, %cst_14 {dimension_numbers = #tpu.dot_dimension_numbers<[1], [0], [0], [1], [0, 0, 1, 1], [], []>} : vector<8x256xf32>, vector<256x256xf32>, vector<8x256xf32> -> vector<8x256xf32>
    %19 = vector.broadcast %17 : vector<1x256xf32> to vector<8x256xf32>
    %20 = arith.addf %18, %19 : vector<8x256xf32>
    %cst_15 = arith.constant 5.000000e-01 : f32
    %21 = vector.broadcast %cst_15 : f32 to vector<8x256xf32>
    %22 = arith.mulf %21, %20 : vector<8x256xf32>
    %23 = math.tanh %22 : vector<8x256xf32>
    %cst_16 = arith.constant 5.000000e-01 : f32
    %24 = vector.broadcast %cst_16 : f32 to vector<8x256xf32>
    %25 = arith.mulf %24, %23 : vector<8x256xf32>
    %cst_17 = arith.constant 5.000000e-01 : f32
    %26 = vector.broadcast %cst_17 : f32 to vector<8x256xf32>
    %27 = arith.addf %25, %26 : vector<8x256xf32>
    %c1_18 = arith.constant 1 : index
    %c0_19 = arith.constant 0 : index
    %c0_20 = arith.constant 0 : index
    %28 = vector.load %arg3[%c1_18, %c0_19, %c0_20] : memref<2x256x256xf32, #tpu.memory_space<vmem>>, vector<1x256x256xf32>
    %29 = vector.shape_cast %28 : vector<1x256x256xf32> to vector<256x256xf32>
    %c2 = arith.constant 2 : index
    %c0_21 = arith.constant 0 : index
    %c0_22 = arith.constant 0 : index
    %30 = vector.load %arg6[%c2, %c0_21, %c0_22] : memref<3x1x256xf32, #tpu.memory_space<vmem>>, vector<1x1x256xf32>
    %31 = vector.shape_cast %30 : vector<1x1x256xf32> to vector<1x256xf32>
    %cst_23 = arith.constant dense<0.000000e+00> : vector<8x256xf32>
    %32 = tpu.matmul %27, %29, %cst_23 {dimension_numbers = #tpu.dot_dimension_numbers<[1], [0], [0], [1], [0, 0, 1, 1], [], []>} : vector<8x256xf32>, vector<256x256xf32>, vector<8x256xf32> -> vector<8x256xf32>
    %33 = vector.broadcast %31 : vector<1x256xf32> to vector<8x256xf32>
    %34 = arith.addf %32, %33 : vector<8x256xf32>
    %cst_24 = arith.constant 5.000000e-01 : f32
    %35 = vector.broadcast %cst_24 : f32 to vector<8x256xf32>
    %36 = arith.mulf %35, %34 : vector<8x256xf32>
    %37 = math.tanh %36 : vector<8x256xf32>
    %cst_25 = arith.constant 5.000000e-01 : f32
    %38 = vector.broadcast %cst_25 : f32 to vector<8x256xf32>
    %39 = arith.mulf %38, %37 : vector<8x256xf32>
    %cst_26 = arith.constant 5.000000e-01 : f32
    %40 = vector.broadcast %cst_26 : f32 to vector<8x256xf32>
    %41 = arith.addf %39, %40 : vector<8x256xf32>
    %c0_27 = arith.constant 0 : index
    %c0_28 = arith.constant 0 : index
    %42 = vector.load %arg4[%c0_27, %c0_28] : memref<256x64xf32, #tpu.memory_space<vmem>>, vector<256x64xf32>
    %c0_29 = arith.constant 0 : index
    %c0_30 = arith.constant 0 : index
    %43 = vector.load %arg7[%c0_29, %c0_30] : memref<1x64xf32, #tpu.memory_space<vmem>>, vector<1x64xf32>
    %cst_31 = arith.constant dense<0.000000e+00> : vector<8x64xf32>
    %44 = tpu.matmul %41, %42, %cst_31 {dimension_numbers = #tpu.dot_dimension_numbers<[1], [0], [0], [1], [0, 0, 1, 1], [], []>} : vector<8x256xf32>, vector<256x64xf32>, vector<8x64xf32> -> vector<8x64xf32>
    %45 = vector.broadcast %43 : vector<1x64xf32> to vector<8x64xf32>
    %46 = arith.addf %44, %45 : vector<8x64xf32>
    %cst_32 = arith.constant 5.000000e-01 : f32
    %47 = vector.broadcast %cst_32 : f32 to vector<8x64xf32>
    %48 = arith.mulf %47, %46 : vector<8x64xf32>
    %49 = math.tanh %48 : vector<8x64xf32>
    %cst_33 = arith.constant 5.000000e-01 : f32
    %50 = vector.broadcast %cst_33 : f32 to vector<8x64xf32>
    %51 = arith.mulf %50, %49 : vector<8x64xf32>
    %cst_34 = arith.constant 5.000000e-01 : f32
    %52 = vector.broadcast %cst_34 : f32 to vector<8x64xf32>
    %53 = arith.addf %51, %52 : vector<8x64xf32>
    %c0_35 = arith.constant 0 : index
    %c0_36 = arith.constant 0 : index
    %c0_37 = arith.constant 0 : index
    %54 = vector.load %arg5[%c0_35, %c0_36, %c0_37] : memref<2x64x64xf32, #tpu.memory_space<vmem>>, vector<1x64x64xf32>
    %55 = vector.shape_cast %54 : vector<1x64x64xf32> to vector<64x64xf32>
    %cst_38 = arith.constant dense<0.000000e+00> : vector<8x64xf32>
    %56 = tpu.matmul %53, %55, %cst_38 {dimension_numbers = #tpu.dot_dimension_numbers<[1], [0], [0], [1], [0, 0, 1, 1], [], []>} : vector<8x64xf32>, vector<64x64xf32>, vector<8x64xf32> -> vector<8x64xf32>
    %cst_39 = arith.constant 1.000000e+00 : f32
    %57 = vector.broadcast %cst_39 : f32 to vector<8x64xf32>
    %58 = arith.subf %57, %56 : vector<8x64xf32>
    %c1_40 = arith.constant 1 : index
    %c0_41 = arith.constant 0 : index
    %c0_42 = arith.constant 0 : index
    %59 = vector.load %arg5[%c1_40, %c0_41, %c0_42] : memref<2x64x64xf32, #tpu.memory_space<vmem>>, vector<1x64x64xf32>
    %60 = vector.shape_cast %59 : vector<1x64x64xf32> to vector<64x64xf32>
    %cst_43 = arith.constant dense<0.000000e+00> : vector<8x64xf32>
    %61 = tpu.matmul %53, %60, %cst_43 {dimension_numbers = #tpu.dot_dimension_numbers<[1], [0], [0], [1], [0, 0, 1, 1], [], []>} : vector<8x64xf32>, vector<64x64xf32>, vector<8x64xf32> -> vector<8x64xf32>
    %cst_44 = arith.constant 1.000000e+00 : f32
    %62 = vector.broadcast %cst_44 : f32 to vector<8x64xf32>
    %63 = arith.subf %62, %61 : vector<8x64xf32>
    %64 = tpu.reciprocal %58 {approx = true} : vector<8x64xf32> -> vector<8x64xf32>
    %65 = arith.mulf %58, %64 : vector<8x64xf32>
    %cst_45 = arith.constant 2.000000e+00 : f32
    %66 = vector.broadcast %cst_45 : f32 to vector<8x64xf32>
    %67 = arith.subf %66, %65 : vector<8x64xf32>
    %68 = arith.mulf %64, %67 : vector<8x64xf32>
    %69 = arith.mulf %63, %68 : vector<8x64xf32>
    %cst_46 = arith.constant 9.99999974E-5 : f32
    %70 = vector.broadcast %cst_46 : f32 to vector<8x64xf32>
    %71 = arith.maximumf %69, %70 : vector<8x64xf32>
    %72 = math.log %71 : vector<8x64xf32>
    %73 = tpu.iota {dimensions = array<i32: 1>} : vector<8x64xi32>
    %c7_i32 = arith.constant 7 : i32
    %74 = vector.broadcast %c7_i32 : i32 to vector<8x64xi32>
    %75 = arith.andi %73, %74 : vector<8x64xi32>
    %c4_i32 = arith.constant 4 : i32
    %76 = vector.broadcast %c4_i32 : i32 to vector<8x64xi32>
    %77 = arith.cmpi slt, %75, %76 : vector<8x64xi32>
    %78 = arith.select %77, %53, %72 : vector<8x64xi1>, vector<8x64xf32>
    %c0_47 = arith.constant 0 : index
    %c0_48 = arith.constant 0 : index
    %79 = vector.load %arg8[%c0_47, %c0_48] : memref<8x64xf32, #tpu.memory_space<vmem>>, vector<8x64xf32>
    tpu.vector_store %arg8[%c0_47, %c0_48], %78 {strides = array<i32>} : memref<8x64xf32, #tpu.memory_space<vmem>>, vector<8x64xf32>,
    return
  }
  func.func @transform_0(%arg0: i32) -> (i32, i32) {
    %c0_i32 = arith.constant 0 : i32
    %c0_i32_0 = arith.constant 0 : i32
    return %arg0, %c0_i32 : i32, i32
  }
  func.func @transform_1(%arg0: i32) -> (i32, i32) {
    %c0_i32 = arith.constant 0 : i32
    %c0_i32_0 = arith.constant 0 : i32
    %c0_i32_1 = arith.constant 0 : i32
    return %c0_i32, %c0_i32_0 : i32, i32
  }
  func.func @transform_2(%arg0: i32) -> (i32, i32, i32) {
    %c0_i32 = arith.constant 0 : i32
    %c0_i32_0 = arith.constant 0 : i32
    %c0_i32_1 = arith.constant 0 : i32
    %c0_i32_2 = arith.constant 0 : i32
    return %c0_i32, %c0_i32_0, %c0_i32_1 : i32, i32, i32
  }
  func.func @transform_3(%arg0: i32) -> (i32, i32) {
    %c0_i32 = arith.constant 0 : i32
    %c0_i32_0 = arith.constant 0 : i32
    %c0_i32_1 = arith.constant 0 : i32
    return %c0_i32, %c0_i32_0 : i32, i32
  }
  func.func @transform_4(%arg0: i32) -> (i32, i32, i32) {
    %c0_i32 = arith.constant 0 : i32
    %c0_i32_0 = arith.constant 0 : i32
    %c0_i32_1 = arith.constant 0 : i32
    %c0_i32_2 = arith.constant 0 : i32
    return %c0_i32, %c0_i32_0, %c0_i32_1 : i32, i32, i32
  }
  func.func @transform_5(%arg0: i32) -> (i32, i32, i32) {
    %c0_i32 = arith.constant 0 : i32
    %c0_i32_0 = arith.constant 0 : i32
    %c0_i32_1 = arith.constant 0 : i32
    %c0_i32_2 = arith.constant 0 : i32
    return %c0_i32, %c0_i32_0, %c0_i32_1 : i32, i32, i32
  }
  func.func @transform_6(%arg0: i32) -> (i32, i32) {
    %c0_i32 = arith.constant 0 : i32
    %c0_i32_0 = arith.constant 0 : i32
    %c0_i32_1 = arith.constant 0 : i32
    return %c0_i32, %c0_i32_0 : i32, i32
  }
  func.func @transform_7(%arg0: i32) -> (i32, i32) {
    %c0_i32 = arith.constant 0 : i32
    %c0_i32_0 = arith.constant 0 : i32
    return %arg0, %c0_i32 : i32, i32
  }
}

</mosaic_0001>

<bundles_post_ra>
// kernel: tpu_custom_call.1
= control target key start
LH: loop header
LB: loop body
LE: loop exit
PB: predicated region body
PF: predicated region fallthrough
CT: control target
= control target key end

     0   :  { %12 = vsyncpa [#allocation3], 0  ;;  %s1098_s0 = inlined_call_operand.hbm [shape: f32[8,128], index: 0, kind: input, shape index: {}]   ;;  %s1099_s1 = inlined_call_operand.vmem [shape: f32[128,256], index: 1, kind: input, shape index: {}]   ;;  %s1100_s2 = inlined_call_operand.hbm [shape: f32[2,256,256], index: 2, kind: input, shape index: {}]   ;;  %s1101_s3 = inlined_call_operand.vmem [shape: f32[256,64], index: 3, kind: input, shape index: {}]   ;;  %s1102_s4 = inlined_call_operand.vmem [shape: f32[2,64,64], index: 4, kind: input, shape index: {}]   ;;  %s1103_s5 = inlined_call_operand.hbm [shape: f32[3,1,256], index: 5, kind: input, shape index: {}]   ;;  %s1104_s6 = inlined_call_operand.vmem [shape: f32[1,64], index: 6, kind: input, shape index: {}]   ;;  %s1105_s7 = inlined_call_operand.hbm [shape: f32[8,64], index: 7, kind: output, shape index: {}]  }
   0x1   :  { %13 = vsyncpa [#allocation6], 0  ;;  %s32_s26 = sshll.u32 %s1100_s2, 4  ;;  %s33_s26 = int_to_ptr.hbm [resolvable:$true] %s32_s26 }
   0x2   :  { %14 = vsyncpa [#allocation4], 0  ;;  %s792_s27 = smov [#allocation5]   ;;  %s20_s8 = sshll.u32 %s1098_s0, 4  ;;  %s21_s8 = int_to_ptr.hbm [resolvable:$true] %s20_s8 }
   0x3   :  { %s34_s28 = sshll.u32 %s792_s27, 4  ;;  %s793_s9 = smov 256   ;;  %s35_s28 = int_to_ptr.vmem [resolvable:$true] %s34_s28 }
   0x4   :  { %s794_s10 = smov 16   ;;  %s795_s11 = smov [#allocation2]  }
   0x5   :  { %40 = dma.hbm_to_vmem [thread:$0]  %s33_s26, 16384, %s35_s28, [#allocation6], %s793_s9, %s793_s9, %s794_s10  }
   0x6   :  { %s22_s12 = sshll.u32 %s795_s11, 4  ;;  %s49_s15 = sshll.u32 %s1103_s5, 4  ;;  %s23_s12 = int_to_ptr.vmem [resolvable:$true] %s22_s12  ;;  %s50_s15 = int_to_ptr.hbm [resolvable:$true] %s49_s15 }
   0x7   :  { %25 = dma.hbm_to_vmem [thread:$0]  %s21_s8, 128, %s23_s12, [#allocation3]  }
   0x8   :  { %s796_s2 = smov [#allocation7]   ;;  %s797_s17 = smov 32  }
   0x9   :  { %s51_s16 = sshll.u32 %s796_s2, 4  ;;  %s798_s18 = smov 2   ;;  %s52_s16 = int_to_ptr.vmem [resolvable:$true] %s51_s16 }
   0xa   :  { %57 = dma.hbm_to_vmem [thread:$0]  %s50_s15, 96, %s52_s16, [#allocation6], %s797_s17, %s797_s17, %s798_s18  }
   0xb   :  { %786 = dma.done.wait [#allocation3], 128  }
   0xc   :  { %787 = vsyncadd [#allocation3], 4294967168 }
   0xd   :  { %788 = dma.done.wait [#allocation6], 16480  }
   0xe   :  { %789 = vsyncadd [#allocation6], 4294950816  ;;  %v103_v0 = vld [vmem:[%s1099_s1 + $0xf0] sm:$0xff]  ;;  %v101_v1 = vld [vmem:[%s1099_s1 + $0xe0] sm:$0xff]  ;;  %vm566_vm0 = vcmask 523264   ;;  %s642_s20 = sshll.u32 %s1105_s7, 4  ;;  %s643_s20 = int_to_ptr.hbm [resolvable:$true] %s642_s20 }
   0xf   :  { %v104_v2 = vld [vmem:[%s1099_s1 + $0xf8] sm:$0xff]  ;;  %111 = vmatpush.msra.mxu0 %v103_v0  ;;  %v102_v3 = vld [vmem:[%s1099_s1 + $0xe8] sm:$0xff]  ;;  %v99_v4 = vld [vmem:[%s1099_s1 + $0xd0] sm:$0xff] }
  0x10   :  { %131 = vmatpush.msra.mxu1 %v104_v2  ;;  %v100_v5 = vld [vmem:[%s1099_s1 + $0xd8] sm:$0xff]  ;;  %v97_v6 = vld [vmem:[%s1099_s1 + $0xc0] sm:$0xff]  ;;  %v98_v7 = vld [vmem:[%s1099_s1 + $0xc8] sm:$0xff] }
  0x11   :  { %112 = vmatpush.msra.mxu0 %v101_v1  ;;  %v95_v8 = vld [vmem:[%s1099_s1 + $0xb0] sm:$0xff]  ;;  %v96_v9 = vld [vmem:[%s1099_s1 + $0xb8] sm:$0xff]  ;;  %v93_v10 = vld [vmem:[%s1099_s1 + $0xa0] sm:$0xff] }
  0x12   :  { %132 = vmatpush.msra.mxu1 %v102_v3  ;;  %v94_v11 = vld [vmem:[%s1099_s1 + $0xa8] sm:$0xff]  ;;  %v91_v12 = vld [vmem:[%s1099_s1 + $0x90] sm:$0xff]  ;;  %v92_v13 = vld [vmem:[%s1099_s1 + $0x98] sm:$0xff] }
  0x13   :  { %113 = vmatpush.msra.mxu0 %v99_v4  ;;  %v189_v14 = vld [vmem:[#allocation5 + $0xf0] sm:$0xff]  ;;  %v187_v15 = vld [vmem:[#allocation5 + $0xe0] sm:$0xff]  ;;  %v89_v16 = vld [vmem:[%s1099_s1 + $0x80] sm:$0xff] }
  0x14   :  { %133 = vmatpush.msra.mxu1 %v100_v5  ;;  %v90_v17 = vld [vmem:[%s1099_s1 + $0x88] sm:$0xff]  ;;  %230 = vmatpush.msra.mxu2 %v189_v14  ;;  %v221_v18 = vld [vmem:[#allocation5 + $0x1f0] sm:$0xff]  ;;  %v87_v21 = vld [vmem:[%s1099_s1 + $0x70] sm:$0xff] }
  0x15   :  { %114 = vmatpush.msra.mxu0 %v97_v6  ;;  %v185_v19 = vld [vmem:[#allocation5 + $0xd0] sm:$0xff]  ;;  %v219_v20 = vld [vmem:[#allocation5 + $0x1e0] sm:$0xff]  ;;  %250 = vmatpush.msra.mxu3 %v221_v18  ;;  %v85_v25 = vld [vmem:[%s1099_s1 + $0x60] sm:$0xff] }
  0x16   :  { %134 = vmatpush.msra.mxu1 %v98_v7  ;;  %v88_v22 = vld [vmem:[%s1099_s1 + $0x78] sm:$0xff]  ;;  %231 = vmatpush.msra.mxu2 %v187_v15  ;;  %v183_v23 = vld [vmem:[#allocation5 + $0xc0] sm:$0xff]  ;;  %v83_v29 = vld [vmem:[%s1099_s1 + $0x50] sm:$0xff] }
  0x17   :  { %115 = vmatpush.msra.mxu0 %v95_v8  ;;  %v217_v24 = vld [vmem:[#allocation5 + $0x1d0] sm:$0xff]  ;;  %v86_v26 = vld [vmem:[%s1099_s1 + $0x68] sm:$0xff]  ;;  %251 = vmatpush.msra.mxu3 %v219_v20  ;;  %v81_v33 = vld [vmem:[%s1099_s1 + $0x40] sm:$0xff] }
  0x18   :  { %135 = vmatpush.msra.mxu1 %v96_v9  ;;  %232 = vmatpush.msra.mxu2 %v185_v19  ;;  %v181_v27 = vld [vmem:[#allocation5 + $0xb0] sm:$0xff]  ;;  %v215_v28 = vld [vmem:[#allocation5 + $0x1c0] sm:$0xff]  ;;  %v79_v37 = vld [vmem:[%s1099_s1 + $0x30] sm:$0xff] }
  0x19   :  { %116 = vmatpush.msra.mxu0 %v93_v10  ;;  %v84_v30 = vld [vmem:[%s1099_s1 + $0x58] sm:$0xff]  ;;  %252 = vmatpush.msra.mxu3 %v217_v24  ;;  %v179_v31 = vld [vmem:[#allocation5 + $0xa0] sm:$0xff]  ;;  %v77_v41 = vld [vmem:[%s1099_s1 + $0x20] sm:$0xff] }
  0x1a   :  { %136 = vmatpush.msra.mxu1 %v94_v11  ;;  %233 = vmatpush.msra.mxu2 %v183_v23  ;;  %v213_v32 = vld [vmem:[#allocation5 + $0x1b0] sm:$0xff]  ;;  %v82_v34 = vld [vmem:[%s1099_s1 + $0x48] sm:$0xff]  ;;  %v75_v43 = vld [vmem:[%s1099_s1 + $0x10] sm:$0xff] }
  0x1b   :  { %117 = vmatpush.msra.mxu0 %v91_v12  ;;  %253 = vmatpush.msra.mxu3 %v215_v28  ;;  %v177_v35 = vld [vmem:[#allocation5 + $0x90] sm:$0xff]  ;;  %v211_v36 = vld [vmem:[#allocation5 + $0x1a0] sm:$0xff]  ;;  %v73_v45 = vld [vmem:[%s1099_s1] sm:$0xff] }
  0x1c   :  { %137 = vmatpush.msra.mxu1 %v92_v13  ;;  %234 = vmatpush.msra.mxu2 %v181_v27  ;;  %v80_v38 = vld [vmem:[%s1099_s1 + $0x38] sm:$0xff]  ;;  %v175_v39 = vld [vmem:[#allocation5 + $0x80] sm:$0xff]  ;;  %v72_v47 = vld [vmem:[#allocation2] sm:$0xff] }
  0x1d   :  { %118 = vmatpush.msra.mxu0 %v89_v16  ;;  %254 = vmatpush.msra.mxu3 %v213_v32  ;;  %v209_v40 = vld [vmem:[#allocation5 + $0x190] sm:$0xff]  ;;  %v78_v42 = vld [vmem:[%s1099_s1 + $0x28] sm:$0xff]  ;;  %v190_v48 = vld [vmem:[#allocation5 + $0xf8] sm:$0xff] }
  0x1e   :  { %138 = vmatpush.msra.mxu1 %v90_v17  ;;  %235 = vmatpush.msra.mxu2 %v179_v31  ;;  %v76_v44 = vld [vmem:[%s1099_s1 + $0x18] sm:$0xff]  ;;  %v74_v46 = vld [vmem:[%s1099_s1 + $0x8] sm:$0xff]  ;;  %v222_v49 = vld [vmem:[#allocation5 + $0x1f8] sm:$0xff] }
  0x1f   :  { %119 = vmatpush.msra.mxu0 %v87_v21  ;;  %255 = vmatpush.msra.mxu3 %v211_v36  ;;  %v188_v50 = vld [vmem:[#allocation5 + $0xe8] sm:$0xff]  ;;  %v186_v52 = vld [vmem:[#allocation5 + $0xd8] sm:$0xff]  ;;  %v173_v63 = vld [vmem:[#allocation5 + $0x70] sm:$0xff] }
  0x20   :  { %139 = vmatpush.msra.mxu1 %v88_v22  ;;  %236 = vmatpush.msra.mxu2 %v177_v35  ;;  %v220_v51 = vld [vmem:[#allocation5 + $0x1e8] sm:$0xff]  ;;  %v218_v53 = vld [vmem:[#allocation5 + $0x1d8] sm:$0xff]  ;;  %v207_v0 = vld [vmem:[#allocation5 + $0x180] sm:$0xff] }
  0x21   :  { %120 = vmatpush.msra.mxu0 %v85_v25  ;;  %256 = vmatpush.msra.mxu3 %v209_v40  ;;  %v184_v54 = vld [vmem:[#allocation5 + $0xc8] sm:$0xff]  ;;  %v182_v56 = vld [vmem:[#allocation5 + $0xb8] sm:$0xff]  ;;  %v171_v3 = vld [vmem:[#allocation5 + $0x60] sm:$0xff] }
  0x22   :  { %140 = vmatpush.msra.mxu1 %v86_v26  ;;  %237 = vmatpush.msra.mxu2 %v175_v39  ;;  %v216_v55 = vld [vmem:[#allocation5 + $0x1c8] sm:$0xff]  ;;  %v214_v57 = vld [vmem:[#allocation5 + $0x1b8] sm:$0xff]  ;;  %v205_v4 = vld [vmem:[#allocation5 + $0x170] sm:$0xff] }
  0x23   :  { %121 = vmatpush.msra.mxu0 %v83_v29  ;;  %v180_v58 = vld [vmem:[#allocation5 + $0xa8] sm:$0xff]  ;;  %v178_v60 = vld [vmem:[#allocation5 + $0x98] sm:$0xff]  ;;  %257 = vmatpush.msra.mxu3 %v207_v0  ;;  %v169_v7 = vld [vmem:[#allocation5 + $0x50] sm:$0xff] }
  0x24   :  { %141 = vmatpush.msra.mxu1 %v84_v30  ;;  %v212_v59 = vld [vmem:[#allocation5 + $0x1a8] sm:$0xff]  ;;  %v210_v61 = vld [vmem:[#allocation5 + $0x198] sm:$0xff]  ;;  %238 = vmatpush.msra.mxu2 %v173_v63  ;;  %v203_v8 = vld [vmem:[#allocation5 + $0x160] sm:$0xff] }
  0x25   :  { %122 = vmatpush.msra.mxu0 %v81_v33  ;;  %v176_v62 = vld [vmem:[#allocation5 + $0x88] sm:$0xff]  ;;  %v174_v1 = vld [vmem:[#allocation5 + $0x78] sm:$0xff]  ;;  %258 = vmatpush.msra.mxu3 %v205_v4  ;;  %v167_v11 = vld [vmem:[#allocation5 + $0x40] sm:$0xff] }
  0x26   :  { %142 = vmatpush.msra.mxu1 %v82_v34  ;;  %v208_v2 = vld [vmem:[#allocation5 + $0x188] sm:$0xff]  ;;  %239 = vmatpush.msra.mxu2 %v171_v3  ;;  %v206_v6 = vld [vmem:[#allocation5 + $0x178] sm:$0xff]  ;;  %v201_v12 = vld [vmem:[#allocation5 + $0x150] sm:$0xff] }
  0x27   :  { %123 = vmatpush.msra.mxu0 %v79_v37  ;;  %v172_v5 = vld [vmem:[#allocation5 + $0x68] sm:$0xff]  ;;  %v170_v9 = vld [vmem:[#allocation5 + $0x58] sm:$0xff]  ;;  %259 = vmatpush.msra.mxu3 %v203_v8  ;;  %v165_v15 = vld [vmem:[#allocation5 + $0x30] sm:$0xff] }
  0x28   :  { %143 = vmatpush.msra.mxu1 %v80_v38  ;;  %240 = vmatpush.msra.mxu2 %v169_v7  ;;  %v204_v10 = vld [vmem:[#allocation5 + $0x168] sm:$0xff]  ;;  %v202_v14 = vld [vmem:[#allocation5 + $0x158] sm:$0xff]  ;;  %v199_v16 = vld [vmem:[#allocation5 + $0x140] sm:$0xff] }
  0x29   :  { %124 = vmatpush.msra.mxu0 %v77_v41  ;;  %v168_v13 = vld [vmem:[#allocation5 + $0x48] sm:$0xff]  ;;  %260 = vmatpush.msra.mxu3 %v201_v12  ;;  %v166_v17 = vld [vmem:[#allocation5 + $0x38] sm:$0xff]  ;;  %v163_v19 = vld [vmem:[#allocation5 + $0x20] sm:$0xff] }
  0x2a   :  { %144 = vmatpush.msra.mxu1 %v78_v42  ;;  %241 = vmatpush.msra.mxu2 %v167_v11  ;;  %v200_v18 = vld [vmem:[#allocation5 + $0x148] sm:$0xff]  ;;  %v197_v20 = vld [vmem:[#allocation5 + $0x130] sm:$0xff]  ;;  %v198_v22 = vld [vmem:[#allocation5 + $0x138] sm:$0xff] }
  0x2b   :  { %125 = vmatpush.msra.mxu0 %v75_v43  ;;  %261 = vmatpush.msra.mxu3 %v199_v16  ;;  %v164_v21 = vld [vmem:[#allocation5 + $0x28] sm:$0xff]  ;;  %v161_v23 = vld [vmem:[#allocation5 + $0x10] sm:$0xff]  ;;  %v195_v24 = vld [vmem:[#allocation5 + $0x120] sm:$0xff] }
  0x2c   :  { %145 = vmatpush.msra.mxu1 %v76_v44  ;;  %242 = vmatpush.msra.mxu2 %v165_v15  ;;  %v162_v25 = vld [vmem:[#allocation5 + $0x18] sm:$0xff]  ;;  %v196_v26 = vld [vmem:[#allocation5 + $0x128] sm:$0xff]  ;;  %v159_v27 = vld [vmem:[#allocation5] sm:$0xff] }
  0x2d   :  { %126 = vmatpush.msra.mxu0 %v73_v45  ;;  %262 = vmatpush.msra.mxu3 %v197_v20  ;;  %v193_v28 = vld [vmem:[#allocation5 + $0x110] sm:$0xff]  ;;  %v160_v29 = vld [vmem:[#allocation5 + $0x8] sm:$0xff]  ;;  %v194_v30 = vld [vmem:[#allocation5 + $0x118] sm:$0xff] }
  0x2e   :  { %146 = vmatpush.msra.mxu1 %v74_v46  ;;  %127 = vmatmul.f32.vlgmr.msra.gmra.mxu0 %v72_v47  ;;  %v191_v31 = vld [vmem:[#allocation5 + $0x100] sm:$0xff]  ;;  %v192_v32 = vld [vmem:[#allocation5 + $0x108] sm:$0xff]  ;;  %v381_v33 = vld [vmem:[#allocation5 + $0x3f0] sm:$0xff] }
  0x2f   :  { %147 = vmatmul.f32.vlgmr.msra.gmra.mxu1 %v72_v47  ;;  %270 = vmatpush.msrb.mxu0 %v190_v48  ;;  %v382_v34 = vld [vmem:[#allocation5 + $0x3f8] sm:$0xff]  ;;  %v379_v35 = vld [vmem:[#allocation5 + $0x3e0] sm:$0xff]  ;;  %v380_v36 = vld [vmem:[#allocation5 + $0x3e8] sm:$0xff] }
  0x30   :  { %290 = vmatpush.msrb.mxu1 %v222_v49  ;;  %243 = vmatpush.msra.mxu2 %v163_v19  ;;  %v377_v37 = vld [vmem:[#allocation5 + $0x3d0] sm:$0xff]  ;;  %v350_v39 = vld [vmem:[#allocation5 + $0x2f8] sm:$0xff]  ;;  %v347_v41 = vld [vmem:[#allocation5 + $0x2e0] sm:$0xff] }
  0x31   :  { %271 = vmatpush.msrb.mxu0 %v188_v50  ;;  %263 = vmatpush.msra.mxu3 %v195_v24  ;;  %v349_v38 = vld [vmem:[#allocation5 + $0x2f0] sm:$0xff]  ;;  %v378_v40 = vld [vmem:[#allocation5 + $0x3d8] sm:$0xff]  ;;  %v375_v42 = vld [vmem:[#allocation5 + $0x3c0] sm:$0xff] }
  0x32   :  { %291 = vmatpush.msrb.mxu1 %v220_v51  ;;  %244 = vmatpush.msra.mxu2 %v161_v23  ;;  %v348_v43 = vld [vmem:[#allocation5 + $0x2e8] sm:$0xff]  ;;  %v345_v44 = vld [vmem:[#allocation5 + $0x2d0] sm:$0xff]  ;;  %v346_v46 = vld [vmem:[#allocation5 + $0x2d8] sm:$0xff] }
  0x33   :  { %272 = vmatpush.msrb.mxu0 %v186_v52  ;;  %264 = vmatpush.msra.mxu3 %v193_v28  ;;  %v376_v45 = vld [vmem:[#allocation5 + $0x3c8] sm:$0xff]  ;;  %v373_v47 = vld [vmem:[#allocation5 + $0x3b0] sm:$0xff]  ;;  %v343_v48 = vld [vmem:[#allocation5 + $0x2c0] sm:$0xff] }
  0x34   :  { %292 = vmatpush.msrb.mxu1 %v218_v53  ;;  %245 = vmatpush.msra.mxu2 %v159_v27  ;;  %v374_v49 = vld [vmem:[#allocation5 + $0x3b8] sm:$0xff]  ;;  %v344_v50 = vld [vmem:[#allocation5 + $0x2c8] sm:$0xff]  ;;  %v371_v51 = vld [vmem:[#allocation5 + $0x3a0] sm:$0xff] }
  0x35   :  { %273 = vmatpush.msrb.mxu0 %v184_v54  ;;  %265 = vmatpush.msra.mxu3 %v191_v31  ;;  %v105_v52 = vld [vmem:[#allocation7] sm:$0x3]  ;;  %v372_v53 = vld [vmem:[#allocation5 + $0x3a8] sm:$0xff]  ;;  %v369_v54 = vld [vmem:[#allocation5 + $0x390] sm:$0xff] }
  0x36   :  { %293 = vmatpush.msrb.mxu1 %v216_v55  ;;  %390 = vmatpush.msrb.mxu2 %v349_v38  ;;  %v370_v55 = vld [vmem:[#allocation5 + $0x398] sm:$0xff]  ;;  %v367_v7 = vld [vmem:[#allocation5 + $0x380] sm:$0xff]  ;;  %v365_v11 = vld [vmem:[#allocation5 + $0x370] sm:$0xff] }
  0x37   :  { %274 = vmatpush.msrb.mxu0 %v182_v56  ;;  %410 = vmatpush.msrb.mxu3 %v381_v33  ;;  %v107_v56 = vperm.slane %v105_v52, 0  ;;  %v342_v8 = vld [vmem:[#allocation5 + $0x2b8] sm:$0xff]  ;;  %v340_v12 = vld [vmem:[#allocation5 + $0x2a8] sm:$0xff]  ;;  %v363_v15 = vld [vmem:[#allocation5 + $0x360] sm:$0xff] }
  0x38   :  { %294 = vmatpush.msrb.mxu1 %v214_v57  ;;  %391 = vmatpush.msrb.mxu2 %v347_v41  ;;  %v108_v57 = vperm.slane %v105_v52, 1  ;;  %v338_v16 = vld [vmem:[#allocation5 + $0x298] sm:$0xff]  ;;  %v361_v19 = vld [vmem:[#allocation5 + $0x350] sm:$0xff]  ;;  %v336_v20 = vld [vmem:[#allocation5 + $0x288] sm:$0xff] }
  0x39   :  { %275 = vmatpush.msrb.mxu0 %v180_v58  ;;  %411 = vmatpush.msrb.mxu3 %v379_v35  ;;  %v359_v23 = vld [vmem:[#allocation5 + $0x340] sm:$0xff]  ;;  %v334_v24 = vld [vmem:[#allocation5 + $0x278] sm:$0xff]  ;;  %v357_v27 = vld [vmem:[#allocation5 + $0x330] sm:$0xff] }
  0x3a   :  { %295 = vmatpush.msrb.mxu1 %v212_v59  ;;  %392 = vmatpush.msrb.mxu2 %v345_v44  ;;  %v332_v28 = vld [vmem:[#allocation5 + $0x268] sm:$0xff]  ;;  %v355_v31 = vld [vmem:[#allocation5 + $0x320] sm:$0xff]  ;;  %v353_v35 = vld [vmem:[#allocation5 + $0x310] sm:$0xff] }
  0x3b   :  { %276 = vmatpush.msrb.mxu0 %v178_v60  ;;  %412 = vmatpush.msrb.mxu3 %v377_v37  ;;  %v356_v33 = vld [vmem:[#allocation5 + $0x328] sm:$0xff]  ;;  %v354_v37 = vld [vmem:[#allocation5 + $0x318] sm:$0xff]  ;;  %v325_v38 = vld [vmem:[#allocation5 + $0x230] sm:$0xff] }
  0x3c   :  { %296 = vmatpush.msrb.mxu1 %v210_v61  ;;  %393 = vmatpush.msrb.mxu2 %v343_v48  ;;  %v352_v41 = vld [vmem:[#allocation5 + $0x308] sm:$0xff]  ;;  %v321_v44 = vld [vmem:[#allocation5 + $0x210] sm:$0xff]  ;;  %v507_v52 = vld [vmem:[%s1101_s3 + $0xe8] sm:$0xff] }
  0x3d   :  { %277 = vmatpush.msrb.mxu0 %v176_v62  ;;  %413 = vmatpush.msrb.mxu3 %v375_v42  ;;  %v323_v42 = vld [vmem:[#allocation5 + $0x220] sm:$0xff]  ;;  %v509_v48 = vld [vmem:[%s1101_s3 + $0xf8] sm:$0xff] }
  0x3e   :  { %297 = vmatpush.msrb.mxu1 %v208_v2 }
  0x3f   :  { %278 = vmatpush.msrb.mxu0 %v174_v1  ;;  %414 = vmatpush.msrb.mxu3 %v373_v47  ;;  %v320_v47 = vld [vmem:[#allocation5 + $0x208] sm:$0xff] }
  0x40   :  { %298 = vmatpush.msrb.mxu1 %v206_v6  ;;  %v341_v6 = vld [vmem:[#allocation5 + $0x2b0] sm:$0xff] }
  0x41   :  { %279 = vmatpush.msrb.mxu0 %v172_v5  ;;  %415 = vmatpush.msrb.mxu3 %v371_v51  ;;  %v224_v51 = vld [vmem:[#allocation7 + $0x2] sm:$0x3] }
  0x42   :  { %299 = vmatpush.msrb.mxu1 %v204_v10  ;;  %394 = vmatpush.msrb.mxu2 %v341_v6  ;;  %v339_v10 = vld [vmem:[#allocation5 + $0x2a0] sm:$0xff] }
  0x43   :  { %280 = vmatpush.msrb.mxu0 %v170_v9  ;;  %416 = vmatpush.msrb.mxu3 %v369_v54  ;;  %v368_v9 = vld [vmem:[#allocation5 + $0x388] sm:$0xff]  ;;  %v227_v54 = vperm.slane %v224_v51, 1 }
  0x44   :  { %300 = vmatpush.msrb.mxu1 %v202_v14  ;;  %395 = vmatpush.msrb.mxu2 %v339_v10  ;;  %v337_v14 = vld [vmem:[#allocation5 + $0x290] sm:$0xff]  ;;  %v491_v10 = vld [vmem:[%s1101_s3 + $0x68] sm:$0xff] }
  0x45   :  { %281 = vmatpush.msrb.mxu0 %v168_v13  ;;  %417 = vmatpush.msrb.mxu3 %v367_v7  ;;  %v366_v13 = vld [vmem:[#allocation5 + $0x378] sm:$0xff] }
  0x46   :  { %301 = vmatpush.msrb.mxu1 %v200_v18  ;;  %396 = vmatpush.msrb.mxu2 %v337_v14  ;;  %v335_v18 = vld [vmem:[#allocation5 + $0x280] sm:$0xff]  ;;  %v489_v14 = vld [vmem:[%s1101_s3 + $0x58] sm:$0xff] }
  0x47   :  { %282 = vmatpush.msrb.mxu0 %v166_v17  ;;  %418 = vmatpush.msrb.mxu3 %v365_v11  ;;  %v364_v17 = vld [vmem:[#allocation5 + $0x368] sm:$0xff] }
  0x48   :  { %302 = vmatpush.msrb.mxu1 %v198_v22  ;;  %397 = vmatpush.msrb.mxu2 %v335_v18  ;;  %v333_v22 = vld [vmem:[#allocation5 + $0x270] sm:$0xff]  ;;  %v504_v11 = vld [vmem:[%s1101_s3 + $0xd0] sm:$0xff]  ;;  %v487_v18 = vld [vmem:[%s1101_s3 + $0x48] sm:$0xff] }
  0x49   :  { %283 = vmatpush.msrb.mxu0 %v164_v21  ;;  %419 = vmatpush.msrb.mxu3 %v363_v15  ;;  %v362_v21 = vld [vmem:[#allocation5 + $0x358] sm:$0xff] }
  0x4a   :  { %303 = vmatpush.msrb.mxu1 %v196_v26  ;;  %398 = vmatpush.msrb.mxu2 %v333_v22  ;;  %v331_v26 = vld [vmem:[#allocation5 + $0x260] sm:$0xff]  ;;  %v502_v15 = vld [vmem:[%s1101_s3 + $0xc0] sm:$0xff]  ;;  %v485_v22 = vld [vmem:[%s1101_s3 + $0x38] sm:$0xff] }
  0x4b   :  { %284 = vmatpush.msrb.mxu0 %v162_v25  ;;  %420 = vmatpush.msrb.mxu3 %v361_v19  ;;  %v360_v25 = vld [vmem:[#allocation5 + $0x348] sm:$0xff] }
  0x4c   :  { %304 = vmatpush.msrb.mxu1 %v194_v30  ;;  %399 = vmatpush.msrb.mxu2 %v331_v26  ;;  %v329_v30 = vld [vmem:[#allocation5 + $0x250] sm:$0xff]  ;;  %v500_v19 = vld [vmem:[%s1101_s3 + $0xb0] sm:$0xff]  ;;  %v483_v26 = vld [vmem:[%s1101_s3 + $0x28] sm:$0xff] }
  0x4d   :  { %285 = vmatpush.msrb.mxu0 %v160_v29  ;;  %421 = vmatpush.msrb.mxu3 %v359_v23  ;;  %v358_v29 = vld [vmem:[#allocation5 + $0x338] sm:$0xff] }
  0x4e   :  { %305 = vmatpush.msrb.mxu1 %v192_v32  ;;  %v330_v32 = vld [vmem:[#allocation5 + $0x258] sm:$0xff]  ;;  %400 = vmatpush.msrb.mxu2 %v329_v30  ;;  %v481_v30 = vld [vmem:[%s1101_s3 + $0x18] sm:$0xff] }
  0x4f   :  { %430 = vmatpush.msra.mxu0 %v350_v39  ;;  %422 = vmatpush.msrb.mxu3 %v357_v27  ;;  %v351_v39 = vld [vmem:[#allocation5 + $0x300] sm:$0xff]  ;;  %v498_v23 = vld [vmem:[%s1101_s3 + $0xa0] sm:$0xff]  ;;  %v496_v27 = vld [vmem:[%s1101_s3 + $0x90] sm:$0xff] }
  0x50   :  { %450 = vmatpush.msra.mxu1 %v382_v34  ;;  %v327_v34 = vld [vmem:[#allocation5 + $0x240] sm:$0xff] }
  0x51   :  { %431 = vmatpush.msra.mxu0 %v348_v43  ;;  %423 = vmatpush.msrb.mxu3 %v355_v31  ;;  %v324_v43 = vld [vmem:[#allocation5 + $0x228] sm:$0xff]  ;;  %v494_v31 = vld [vmem:[%s1101_s3 + $0x80] sm:$0xff] }
  0x52   :  { %451 = vmatpush.msra.mxu1 %v380_v36  ;;  %v328_v36 = vld [vmem:[#allocation5 + $0x248] sm:$0xff]  ;;  %401 = vmatpush.msrb.mxu2 %v327_v34  ;;  %v478_v34 = vld [vmem:[%s1101_s3] sm:$0xff] }
  0x53   :  { %432 = vmatpush.msra.mxu0 %v346_v46  ;;  %424 = vmatpush.msrb.mxu3 %v353_v35  ;;  %v319_v46 = vld [vmem:[#allocation5 + $0x200] sm:$0xff] }
  0x54   :  { %452 = vmatpush.msra.mxu1 %v378_v40  ;;  %v326_v40 = vld [vmem:[#allocation5 + $0x238] sm:$0xff]  ;;  %402 = vmatpush.msrb.mxu2 %v325_v38  ;;  %v384_v35 = vld [vmem:[#allocation7 + $0x4] sm:$0x3] }
  0x55   :  { %433 = vmatpush.msra.mxu0 %v344_v50  ;;  %425 = vmatpush.msrb.mxu3 %v351_v39  ;;  %v493_v50 = vld [vmem:[%s1101_s3 + $0x78] sm:$0xff] }
  0x56   :  { %453 = vmatpush.msra.mxu1 %v376_v45  ;;  %403 = vmatpush.msrb.mxu2 %v323_v42  ;;  %v322_v45 = vld [vmem:[#allocation5 + $0x218] sm:$0xff] }
  0x57   :  { %434 = vmatpush.msra.mxu0 %v342_v8  ;;  %v492_v8 = vld [vmem:[%s1101_s3 + $0x70] sm:$0xff] }
  0x58   :  { %454 = vmatpush.msra.mxu1 %v374_v49  ;;  %404 = vmatpush.msrb.mxu2 %v321_v44  ;;  %v508_v49 = vld [vmem:[%s1101_s3 + $0xf0] sm:$0xff] }
  0x59   :  { %435 = vmatpush.msra.mxu0 %v340_v12  ;;  %v490_v12 = vld [vmem:[%s1101_s3 + $0x60] sm:$0xff] }
  0x5a   :  { %455 = vmatpush.msra.mxu1 %v372_v53  ;;  %405 = vmatpush.msrb.mxu2 %v319_v46  ;;  %v506_v53 = vld [vmem:[%s1101_s3 + $0xe0] sm:$0xff] }
  0x5b   :  { %436 = vmatpush.msra.mxu0 %v338_v16  ;;  %v488_v16 = vld [vmem:[%s1101_s3 + $0x50] sm:$0xff] }
  0x5c   :  { %456 = vmatpush.msra.mxu1 %v370_v55 }
  0x5d   :  { %437 = vmatpush.msra.mxu0 %v336_v20  ;;  %v486_v20 = vld [vmem:[%s1101_s3 + $0x40] sm:$0xff] }
  0x5e   :  { %457 = vmatpush.msra.mxu1 %v368_v9  ;;  %v505_v9 = vld [vmem:[%s1101_s3 + $0xd8] sm:$0xff] }
  0x5f   :  { %438 = vmatpush.msra.mxu0 %v334_v24  ;;  %v484_v24 = vld [vmem:[%s1101_s3 + $0x30] sm:$0xff] }
  0x60   :  { %458 = vmatpush.msra.mxu1 %v366_v13  ;;  %v503_v13 = vld [vmem:[%s1101_s3 + $0xc8] sm:$0xff] }
  0x61   :  { %439 = vmatpush.msra.mxu0 %v332_v28  ;;  %v482_v28 = vld [vmem:[%s1101_s3 + $0x20] sm:$0xff] }
  0x62   :  { %459 = vmatpush.msra.mxu1 %v364_v17  ;;  %v501_v17 = vld [vmem:[%s1101_s3 + $0xb8] sm:$0xff] }
  0x63   :  { %440 = vmatpush.msra.mxu0 %v330_v32  ;;  %v480_v32 = vld [vmem:[%s1101_s3 + $0x10] sm:$0xff] }
  0x64   :  { %460 = vmatpush.msra.mxu1 %v362_v21  ;;  %v499_v21 = vld [vmem:[%s1101_s3 + $0xa8] sm:$0xff] }
  0x65   :  { %441 = vmatpush.msra.mxu0 %v328_v36  ;;  %v387_v36 = vperm.slane %v384_v35, 1 }
  0x66   :  { %461 = vmatpush.msra.mxu1 %v360_v25  ;;  %v497_v25 = vld [vmem:[%s1101_s3 + $0x98] sm:$0xff] }
  0x67   :  { %442 = vmatpush.msra.mxu0 %v326_v40 }
  0x68   :  { %462 = vmatpush.msra.mxu1 %v358_v29  ;;  %v495_v29 = vld [vmem:[%s1101_s3 + $0x88] sm:$0xff] }
  0x69   :  { %443 = vmatpush.msra.mxu0 %v324_v43 }
  0x6a   :  { %463 = vmatpush.msra.mxu1 %v356_v33  ;;  %v479_v33 = vld [vmem:[%s1101_s3 + $0x8] sm:$0xff] }
  0x6b   :  { %444 = vmatpush.msra.mxu0 %v322_v45 }
  0x6c   :  { %464 = vmatpush.msra.mxu1 %v354_v37 }
  0x6d   :  { %445 = vmatpush.msra.mxu0 %v320_v47 }
  0x6e   :  { %465 = vmatpush.msra.mxu1 %v352_v41  ;;  %v386_v41 = vperm.slane %v384_v35, 0 }
  0xab   :  { %v128_v58 = vpop.f32.mrf.mxu0 }
  0xac   :  { %v148_v59 = vpop.f32.mrf.mxu1  ;;  %v129_v60 = vadd.f32 %v128_v58, %v107_v56 }
  0xad   :  { %v149_v61 = vadd.f32 %v148_v59, %v108_v57  ;;  %v226_v59 = vperm.slane %v224_v51, 0 }
  0xae   :  { %v151_v62 = vmul.f32 0.5, %v129_v60 }
  0xaf   :  { %v152_v63 = vmul.f32 0.5, %v149_v61 }
  0xb0   :  { %672 = vtanh.f32 %v151_v62 }
  0xb1   :  { %674 = vtanh.f32 %v152_v63 }
  0xb6   :  { %v673_v0 = vpop.eup %672 }
  0xb7   :  { %v675_v1 = vpop.eup %674  ;;  %v155_v2 = vmul.f32 0.5, %v673_v0 }
  0xb8   :  { %v156_v3 = vmul.f32 0.5, %v675_v1 }
  0xb9   :  { %v157_v4 = vadd.f32 0.5, %v155_v2 }
  0xba   :  { %v158_v5 = vadd.f32 0.5, %v156_v3 }
  0xbb   :  { %246 = vmatmul.f32.vlgmr.msra.gmra.mxu2 %v157_v4  ;;  %286 = vmatmul.f32.vlgmr.msrb.gmra.mxu0 %v157_v4 }
  0xbc   :  { %266 = vmatmul.f32.vlgmr.msra.gmra.mxu3 %v158_v5  ;;  %306 = vmatmul.f32.vlgmr.msrb.gmra.mxu1 %v158_v5 }
  0xbd   :  { %534 = vmatpush.msra.mxu3 %v509_v48  ;;  %514 = vmatpush.msra.mxu2 %v493_v50 }
  0xbf   :  { %535 = vmatpush.msra.mxu3 %v508_v49  ;;  %515 = vmatpush.msra.mxu2 %v492_v8 }
  0xc1   :  { %536 = vmatpush.msra.mxu3 %v507_v52  ;;  %516 = vmatpush.msra.mxu2 %v491_v10 }
  0xc3   :  { %537 = vmatpush.msra.mxu3 %v506_v53  ;;  %517 = vmatpush.msra.mxu2 %v490_v12 }
  0xc5   :  { %538 = vmatpush.msra.mxu3 %v505_v9  ;;  %518 = vmatpush.msra.mxu2 %v489_v14 }
  0xc7   :  { %539 = vmatpush.msra.mxu3 %v504_v11  ;;  %519 = vmatpush.msra.mxu2 %v488_v16 }
  0xc9   :  { %540 = vmatpush.msra.mxu3 %v503_v13  ;;  %520 = vmatpush.msra.mxu2 %v487_v18 }
  0xcb   :  { %541 = vmatpush.msra.mxu3 %v502_v15  ;;  %521 = vmatpush.msra.mxu2 %v486_v20 }
  0xcd   :  { %542 = vmatpush.msra.mxu3 %v501_v17  ;;  %522 = vmatpush.msra.mxu2 %v485_v22 }
  0xcf   :  { %543 = vmatpush.msra.mxu3 %v500_v19  ;;  %523 = vmatpush.msra.mxu2 %v484_v24 }
  0xd1   :  { %544 = vmatpush.msra.mxu3 %v499_v21  ;;  %524 = vmatpush.msra.mxu2 %v483_v26 }
  0xd3   :  { %545 = vmatpush.msra.mxu3 %v498_v23  ;;  %525 = vmatpush.msra.mxu2 %v482_v28  ;;  %v629_v23 = vlaneseq }
  0xd5   :  { %546 = vmatpush.msra.mxu3 %v497_v25  ;;  %526 = vmatpush.msra.mxu2 %v481_v30  ;;  %v630_v26 = vand.u32 127, %v629_v23 }
  0xd7   :  { %547 = vmatpush.msra.mxu3 %v496_v27  ;;  %527 = vmatpush.msra.mxu2 %v480_v32  ;;  %v631_v27 = vand.u32 7, %v630_v26 }
  0xd9   :  { %548 = vmatpush.msra.mxu3 %v495_v29  ;;  %528 = vmatpush.msra.mxu2 %v479_v33  ;;  %vm632_vm1 = vcmp.lt.s32.totalorder %v631_v27, 4 }
  0xdb   :  { %549 = vmatpush.msra.mxu3 %v494_v31  ;;  %529 = vmatpush.msra.mxu2 %v478_v34 }
 0x138   :  { %v287_v55 = vpop.f32.mrf.mxu0 }
 0x139   :  { %v288_v56 = vadd.f32 %v287_v55, %v227_v54  ;;  %v307_v57 = vpop.f32.mrf.mxu1  ;;  %v565_v54 = vld [vmem:[%s1102_s4 + $0x38] sm:$0xff] }
 0x13a   :  { %v661_v55 = vld [vmem:[%s1102_s4 + $0x78] sm:$0xff]  ;;  %578 = vmatpush.msrb.mxu0 %v565_v54 }
 0x13b   :  { %v308_v58 = vadd.f32 %v307_v57, %v288_v56  ;;  %608 = vmatpush.msrb.mxu1 %v661_v55  ;;  %v564_v56 = vld [vmem:[%s1102_s4 + $0x30] sm:$0xff] }
 0x13c   :  { %v660_v57 = vld [vmem:[%s1102_s4 + $0x70] sm:$0xff]  ;;  %579 = vmatpush.msrb.mxu0 %v564_v56 }
 0x13d   :  { %v311_v60 = vmul.f32 0.5, %v308_v58  ;;  %609 = vmatpush.msrb.mxu1 %v660_v57  ;;  %v563_v58 = vld [vmem:[%s1102_s4 + $0x28] sm:$0xff] }
 0x13e   :  { %v247_v61 = vpop.f32.mrf.mxu2  ;;  %580 = vmatpush.msrb.mxu0 %v563_v58 }
 0x13f   :  { %676 = vtanh.f32 %v311_v60  ;;  %v248_v62 = vadd.f32 %v247_v61, %v226_v59  ;;  %v267_v63 = vpop.f32.mrf.mxu3  ;;  %v659_v59 = vld [vmem:[%s1102_s4 + $0x68] sm:$0xff]  ;;  %v562_v60 = vld [vmem:[%s1102_s4 + $0x20] sm:$0xff] }
 0x140   :  { %610 = vmatpush.msrb.mxu1 %v659_v59  ;;  %v658_v61 = vld [vmem:[%s1102_s4 + $0x60] sm:$0xff]  ;;  %581 = vmatpush.msrb.mxu0 %v562_v60 }
 0x141   :  { %v268_v0 = vadd.f32 %v267_v63, %v248_v62  ;;  %v561_v62 = vld [vmem:[%s1102_s4 + $0x18] sm:$0xff] }
 0x142   :  { %611 = vmatpush.msrb.mxu1 %v658_v61  ;;  %v657_v63 = vld [vmem:[%s1102_s4 + $0x58] sm:$0xff]  ;;  %582 = vmatpush.msrb.mxu0 %v561_v62 }
 0x143   :  { %v310_v1 = vmul.f32 0.5, %v268_v0  ;;  %v560_v0 = vld [vmem:[%s1102_s4 + $0x10] sm:$0xff] }
 0x144   :  { %612 = vmatpush.msrb.mxu1 %v657_v63  ;;  %583 = vmatpush.msrb.mxu0 %v560_v0 }
 0x145   :  { %v677_v2 = vpop.eup %676  ;;  %678 = vtanh.f32 %v310_v1  ;;  %v656_v1 = vld [vmem:[%s1102_s4 + $0x50] sm:$0xff] }
 0x146   :  { %v315_v3 = vmul.f32 0.5, %v677_v2  ;;  %613 = vmatpush.msrb.mxu1 %v656_v1  ;;  %v559_v2 = vld [vmem:[%s1102_s4 + $0x8] sm:$0xff] }
 0x147   :  { %584 = vmatpush.msrb.mxu0 %v559_v2 }
 0x148   :  { %v317_v4 = vadd.f32 0.5, %v315_v3  ;;  %v655_v3 = vld [vmem:[%s1102_s4 + $0x48] sm:$0xff] }
 0x149   :  { %614 = vmatpush.msrb.mxu1 %v655_v3 }
 0x14a   :  { %426 = vmatmul.f32.vlgmr.msrb.gmra.mxu3 %v317_v4  ;;  %466 = vmatmul.f32.vlgmr.msra.gmra.mxu1 %v317_v4  ;;  %v558_v4 = vld [vmem:[%s1102_s4] sm:$0xff] }
 0x14b   :  { %v679_v5 = vpop.eup %678  ;;  %585 = vmatpush.msrb.mxu0 %v558_v4 }
 0x14c   :  { %v314_v6 = vmul.f32 0.5, %v679_v5  ;;  %v654_v5 = vld [vmem:[%s1102_s4 + $0x40] sm:$0xff]  ;;  %s799_s4 = smov [#allocation8]  }
 0x14d   :  { %615 = vmatpush.msrb.mxu1 %v654_v5 }
 0x14e   :  { %v316_v7 = vadd.f32 0.5, %v314_v6  ;;  %v671_v6 = vld [vmem:[%s1104_s6] ss:$0 sm:$0xff]  ;;  %s640_s6 = sshll.u32 %s799_s4, 4  ;;  %s641_s6 = int_to_ptr.vmem [resolvable:$true] %s640_s6 }
 0x150   :  { %406 = vmatmul.f32.vlgmr.msrb.gmra.mxu2 %v316_v7  ;;  %446 = vmatmul.f32.vlgmr.msra.gmra.mxu0 %v316_v7 }
 0x1c7   :  { %v467_v39 = vpop.f32.mrf.mxu1 }
 0x1cd   :  { %v447_v37 = vpop.f32.mrf.mxu0  ;;  %v427_v45 = vpop.f32.mrf.mxu3 }
 0x1ce   :  { %v448_v38 = vadd.f32 %v447_v37, %v387_v36 }
 0x1d0   :  { %v468_v40 = vadd.f32 %v467_v39, %v448_v38 }
 0x1d2   :  { %v471_v42 = vmul.f32 0.5, %v468_v40 }
 0x1d3   :  { %v407_v43 = vpop.f32.mrf.mxu2 }
 0x1d4   :  { %680 = vtanh.f32 %v471_v42  ;;  %v408_v44 = vadd.f32 %v407_v43, %v386_v41 }
 0x1d6   :  { %v428_v46 = vadd.f32 %v427_v45, %v408_v44 }
 0x1d8   :  { %v470_v47 = vmul.f32 0.5, %v428_v46 }
 0x1da   :  { %v681_v48 = vpop.eup %680  ;;  %682 = vtanh.f32 %v470_v47 }
 0x1db   :  { %v475_v49 = vmul.f32 0.5, %v681_v48 }
 0x1dd   :  { %v477_v50 = vadd.f32 0.5, %v475_v49 }
 0x1df   :  { %550 = vmatmul.f32.vlgmr.msra.gmra.mxu3 %v477_v50 }
 0x1e0   :  { %v683_v51 = vpop.eup %682 }
 0x1e1   :  { %v474_v52 = vmul.f32 0.5, %v683_v51 }
 0x1e3   :  { %v476_v53 = vadd.f32 0.5, %v474_v52 }
 0x1e5   :  { %530 = vmatmul.f32.vlgmr.msra.gmra.mxu2 %v476_v53 }
 0x262   :  { %v551_v9 = vpop.f32.mrf.mxu3 }
 0x268   :  { %v531_v7 = vpop.f32.mrf.mxu2 }
 0x269   :  { %v532_v8 = vadd.f32 %v671_v6, %v531_v7 }
 0x26b   :  { %v552_v10 = vadd.f32 %v551_v9, %v532_v8 }
 0x26d   :  { %v554_v11 = vmul.f32 0.5, %v552_v10 }
 0x26f   :  { %684 = vtanh.f32 %v554_v11 }
 0x275   :  { %v685_v12 = vpop.eup %684 }
 0x276   :  { %v556_v13 = vmul.f32 0.5, %v685_v12 }
 0x278   :  { %v557_v14 = vadd.f32 0.5, %v556_v13 }
 0x27a   :  { %653 = vmatmul.msk.f32.vlgmr.msrb.gmra.mxu0 %vm566_vm0, %v557_v14  ;;  %662 = vmatmul.msk.f32.vlgmr.msrb.gmra.mxu1 %vm566_vm0, %v557_v14 }
 0x2f7   :  { %v587_v15 = vpop.f32.mrf.mxu0  ;;  %v617_v19 = vpop.f32.mrf.mxu1 }
 0x2f8   :  { %v590_v16 = vsub.f32 1.0, %v587_v15  ;;  %v620_v21 = vsub.f32 1.0, %v617_v19 }
 0x2fa   :  { %686 = vrcp.f32 %v590_v16 }
 0x300   :  { %v687_v17 = vpop.eup %686 }
 0x301   :  { %v622_v18 = vmul.f32 %v687_v17, %v590_v16 }
 0x303   :  { %v623_v20 = vsub.f32 2.0, %v622_v18 }
 0x305   :  { %v624_v22 = vmul.f32 %v687_v17, %v623_v20 }
 0x307   :  { %v625_v24 = vmul.f32 %v624_v22, %v620_v21 }
 0x309   :  { %v626_v25 = vmax.f32 %v625_v24, 0.0001 }
 0x30b   :  { %688 = vlog2.f32 %v626_v25 }
 0x311   :  { %v689_v28 = vpop.eup %688 }
 0x312   :  { %v628_v29 = vmul.f32 0.6931472, %v689_v28 }
 0x314   :  { %v633_v30 = vsel %vm632_vm1, %v557_v14, %v628_v29 }
 0x315   :  { %634 = vst.msk [vmem:[#allocation8] sm:$0xff] %vm566_vm0, %v633_v30 }
 0x316   :  { %645 = dma.vmem_to_hbm [thread:$0]  %s641_s6, 128, %s643_s20, [#allocation4]  }
 0x317   :  { %790 = dma.done.wait [#allocation4], 128  }
 0x318   :  { %791 = vsyncadd [#allocation4], 4294967168 }
 0x319   :  { %650 = vsyncpa [#allocation3], 1 }
 0x31a   :  { %651 = vsyncpa [#allocation6], 1 }
 0x31b   :  { %652 = vsyncpa [#allocation4], 1 }

</bundles_post_ra>
